<compile_context>
chip_gen: v6e
topology: v6e:2x2x1
jax: 0.10.0
libtpu: 0.0.40
codegen_flags: <defaults>
</compile_context>

<pallas_src>
import jax
import jax.numpy as jnp
import numpy as np
from jax.experimental import pallas as pl
from jax.experimental.pallas import tpu as pltpu


def se_kernel(x_ref, w1_ref, w2_ref, o_ref):
    # x_ref : (NB, C, HW)  NB batch elements; channels on sublanes, H*W on lanes
    # w1_ref: (Cr, C)      PyTorch Linear(channels, reduced).weight  (no bias)
    # w2_ref: (C, Cr)      PyTorch Linear(reduced, channels).weight  (no bias)
    # o_ref : (NB, C, HW)
    x = x_ref[...]                                              # (NB, C, HW)
    hw = x.shape[2]

    # Squeeze: per-(batch, channel) global average pool (cross-lane reduce, f32 acc).
    pooled = jnp.sum(x.astype(jnp.float32), axis=2) * (1.0 / hw)        # (NB, C)

    # Excite: one batched 2-layer MLP for the whole block (contract on C / Cr).
    h = jnp.einsum("nc,rc->nr", pooled, w1_ref[...].astype(jnp.float32),
                   preferred_element_type=jnp.float32)                  # (NB, Cr)
    h = jnp.maximum(h, 0.0)                                             # ReLU
    s = jnp.einsum("nr,cr->nc", h, w2_ref[...].astype(jnp.float32),
                   preferred_element_type=jnp.float32)                  # (NB, C)
    s = jax.nn.sigmoid(s)                                               # (NB, C)

    # Scale: per-channel gate broadcast over the H*W lane axis, in x's dtype
    # (no f32 widening of bf16 tiles in the scale phase).
    o_ref[...] = (x * s[:, :, None].astype(x.dtype)).astype(o_ref.dtype)


def _pick_block_batch(n, c, hw, itemsize, vmem_block_budget):
    """Largest per-step batch that fits the VMEM budget, keeps >=2 grid steps
    when possible (v7x megacore), and divides N (no ragged last block)."""
    per_elem = 4 * c * hw * itemsize                 # in + out, double-buffered
    nb = max(1, min(n, vmem_block_budget // per_elem))
    if n >= 2:
        nb = min(nb, max(1, n // 2))
    while n % nb:
        nb -= 1
    return nb


def se_layer(x_nchw, w1, w2, *, vmem_block_budget=24 << 20):
    """SELayer forward.

    x_nchw: (N, C, H, W)
    w1    : (Cr, C)  = Linear(channels, channels//reduction, bias=False).weight
    w2    : (C, Cr)  = Linear(channels//reduction, channels, bias=False).weight
    """
    n, c, h, w = x_nchw.shape
    cr = w1.shape[0]
    hw = h * w
    itemsize = jnp.dtype(x_nchw.dtype).itemsize

    nb = _pick_block_batch(n, c, hw, itemsize, vmem_block_budget)

    # Pure reshape (NCHW is row-major over H, W) -- no HBM transpose pass.
    x2 = x_nchw.reshape(n, c, hw)

    cost = pl.CostEstimate(
        flops=2 * n * c * hw + 4 * n * c * cr,
        transcendentals=n * c,
        bytes_accessed=2 * n * c * hw * itemsize
        + 2 * c * cr * jnp.dtype(w1.dtype).itemsize,
    )

    out = pl.pallas_call(
        se_kernel,
        out_shape=jax.ShapeDtypeStruct((n, c, hw), x_nchw.dtype),
        grid_spec=pltpu.PrefetchScalarGridSpec(
            num_scalar_prefetch=0,
            grid=(n // nb,),
            in_specs=[
                pl.BlockSpec((nb, c, hw), lambda i: (i, 0, 0)),
                pl.BlockSpec((cr, c), lambda i: (0, 0)),
                pl.BlockSpec((c, cr), lambda i: (0, 0)),
            ],
            out_specs=pl.BlockSpec((nb, c, hw), lambda i: (i, 0, 0)),
        ),
        compiler_params=pltpu.CompilerParams(
            dimension_semantics=("parallel",),
            vmem_limit_bytes=32 * 1024 * 1024,
        ),
        input_output_aliases={0: 0},     # SE is an in-place channel scale
        cost_estimate=cost,
    )(x2, w1, w2)

    return out.reshape(n, c, h, w)


def reference_se(x, w1, w2):
    pooled = jnp.mean(x, axis=(2, 3))                 # (N, C)
    h = jax.nn.relu(pooled @ w1.T)                    # (N, Cr)
    s = jax.nn.sigmoid(h @ w2.T)                      # (N, C)
    return x * s[:, :, None, None]


if __name__ == "__main__":
    key = jax.random.PRNGKey(0)
    k_x, k_w1, k_w2 = jax.random.split(key, 3)

    # channels=32, reduction=16 -> channels_reduced=2 (module defaults, fc=True).
    # N=4 so the kernel exercises the NB>1 batched path (NB=2, grid of 2 steps).
    N, C, H, W = 4, 32, 16, 16
    reduction = 16
    Cr = C // reduction

    x = jax.random.normal(k_x, (N, C, H, W), dtype=jnp.float32)
    w1 = jax.random.normal(k_w1, (Cr, C), dtype=jnp.float32) * 0.1  # Linear(C, Cr).weight
    w2 = jax.random.normal(k_w2, (C, Cr), dtype=jnp.float32) * 0.1  # Linear(Cr, C).weight

    ref = jax.block_until_ready(reference_se(x, w1, w2))

    out = se_layer(x, w1, w2)
    out = jax.block_until_ready(out)

    assert out.shape == (N, C, H, W)
    np.testing.assert_allclose(np.asarray(out), np.asarray(ref),
                               rtol=1e-5, atol=1e-5)
    print("KERNEL_OK")
</pallas_src>

<mosaic_0001>
module attributes {stable_mosaic.version = 11 : i64} {
  func.func @se_kernel(%arg0: i32, %arg1: memref<2x32x256xf32, #tpu.memory_space<vmem>>, %arg2: memref<2x32xf32, #tpu.memory_space<vmem>>, %arg3: memref<32x2xf32, #tpu.memory_space<vmem>>, %arg4: memref<2x32x256xf32, #tpu.memory_space<vmem>>) attributes {dimension_semantics = [#tpu.dimension_semantics<parallel>], iteration_bounds = array<i64: 2>, scalar_prefetch = 0 : i64, scratch_operands = 0 : i64, tpu.core_type = #tpu.core_type<tc>, window_params = [{transform_indices = @transform_0, window_bounds = array<i64: 2, 32, 256>}, {pipeline_mode = #tpu.pipeline_mode<synchronous>, transform_indices = @transform_1, window_bounds = array<i64: 2, 32>}, {pipeline_mode = #tpu.pipeline_mode<synchronous>, transform_indices = @transform_2, window_bounds = array<i64: 32, 2>}, {transform_indices = @transform_3, window_bounds = array<i64: 2, 32, 256>}]} {
    %c0 = arith.constant 0 : index
    %c0_0 = arith.constant 0 : index
    %c0_1 = arith.constant 0 : index
    %0 = vector.load %arg1[%c0, %c0_0, %c0_1] : memref<2x32x256xf32, #tpu.memory_space<vmem>>, vector<2x32x256xf32>
    %cst = arith.constant dense<0.000000e+00> : vector<2x32xf32>
    %1 = vector.multi_reduction <add>, %0, %cst [2] : vector<2x32x256xf32> to vector<2x32xf32>
    %cst_2 = arith.constant 3.906250e-03 : f32
    %2 = vector.broadcast %cst_2 : f32 to vector<2x32xf32>
    %3 = arith.mulf %1, %2 : vector<2x32xf32>
    %c0_3 = arith.constant 0 : index
    %c0_4 = arith.constant 0 : index
    %4 = vector.load %arg2[%c0_3, %c0_4] : memref<2x32xf32, #tpu.memory_space<vmem>>, vector<2x32xf32>
    "tpu.trace_start"() <{level = 10 : i32, message = "nc,rc->nr"}> : () -> ()
    %cst_5 = arith.constant dense<0.000000e+00> : vector<2x2xf32>
    %5 = tpu.matmul %3, %4, %cst_5 {dimension_numbers = #tpu.dot_dimension_numbers<[1], [1], [0], [0], [0, 0, 1, 0], [], []>} : vector<2x32xf32>, vector<2x32xf32>, vector<2x2xf32> -> vector<2x2xf32>
    "tpu.trace_stop"() : () -> ()
    %cst_6 = arith.constant 0.000000e+00 : f32
    %6 = vector.broadcast %cst_6 : f32 to vector<2x2xf32>
    %7 = arith.maximumf %5, %6 : vector<2x2xf32>
    %c0_7 = arith.constant 0 : index
    %c0_8 = arith.constant 0 : index
    %8 = vector.load %arg3[%c0_7, %c0_8] : memref<32x2xf32, #tpu.memory_space<vmem>>, vector<32x2xf32>
    "tpu.trace_start"() <{level = 10 : i32, message = "nr,cr->nc"}> : () -> ()
    %cst_9 = arith.constant dense<0.000000e+00> : vector<2x32xf32>
    %9 = tpu.matmul %7, %8, %cst_9 {dimension_numbers = #tpu.dot_dimension_numbers<[1], [1], [0], [0], [0, 0, 1, 0], [], []>} : vector<2x2xf32>, vector<32x2xf32>, vector<2x32xf32> -> vector<2x32xf32>
    "tpu.trace_stop"() : () -> ()
    %10 = arith.negf %9 : vector<2x32xf32>
    %11 = math.exp %10 : vector<2x32xf32>
    %cst_10 = arith.constant 1.000000e+00 : f32
    %12 = vector.broadcast %cst_10 : f32 to vector<2x32xf32>
    %13 = arith.addf %12, %11 : vector<2x32xf32>
    %14 = arith.divf %12, %13 : vector<2x32xf32>
    %15 = vector.shape_cast %14 : vector<2x32xf32> to vector<2x32x1xf32>
    %16 = vector.broadcast %15 : vector<2x32x1xf32> to vector<2x32x256xf32>
    %17 = arith.mulf %0, %16 : vector<2x32x256xf32>
    %c0_11 = arith.constant 0 : index
    %c0_12 = arith.constant 0 : index
    %c0_13 = arith.constant 0 : index
    %18 = vector.load %arg4[%c0_11, %c0_12, %c0_13] : memref<2x32x256xf32, #tpu.memory_space<vmem>>, vector<2x32x256xf32>
    tpu.vector_store %arg4[%c0_11, %c0_12, %c0_13], %17 {strides = array<i32>} : memref<2x32x256xf32, #tpu.memory_space<vmem>>, vector<2x32x256xf32>,
    return
  }
  func.func @transform_0(%arg0: i32) -> (i32, i32, i32) {
    %c0_i32 = arith.constant 0 : i32
    %c0_i32_0 = arith.constant 0 : i32
    %c0_i32_1 = arith.constant 0 : i32
    return %arg0, %c0_i32, %c0_i32_0 : i32, i32, i32
  }
  func.func @transform_1(%arg0: i32) -> (i32, i32) {
    %c0_i32 = arith.constant 0 : i32
    %c0_i32_0 = arith.constant 0 : i32
    %c0_i32_1 = arith.constant 0 : i32
    return %c0_i32, %c0_i32_0 : i32, i32
  }
  func.func @transform_2(%arg0: i32) -> (i32, i32) {
    %c0_i32 = arith.constant 0 : i32
    %c0_i32_0 = arith.constant 0 : i32
    %c0_i32_1 = arith.constant 0 : i32
    return %c0_i32, %c0_i32_0 : i32, i32
  }
  func.func @transform_3(%arg0: i32) -> (i32, i32, i32) {
    %c0_i32 = arith.constant 0 : i32
    %c0_i32_0 = arith.constant 0 : i32
    %c0_i32_1 = arith.constant 0 : i32
    return %arg0, %c0_i32, %c0_i32_0 : i32, i32, i32
  }
}

</mosaic_0001>

<bundles_post_ra>
// kernel: tpu_custom_call.1
= control target key start
LH: loop header
LB: loop body
LE: loop exit
PB: predicated region body
PF: predicated region fallthrough
CT: control target
= control target key end

     0   :  { %8 = vsyncpa [#allocation3], 0  ;;  %s1120_s0 = inlined_call_operand.hbm [shape: f32[4,32,256], index: 0, kind: input, shape index: {}, may-alias: {0,3}]   ;;  %s1121_s1 = inlined_call_operand.vmem [shape: f32[2,32], index: 1, kind: input, shape index: {}]   ;;  %s1122_s2 = inlined_call_operand.vmem [shape: f32[32,2], index: 2, kind: input, shape index: {}]   ;;  %s1123_s3 = inlined_call_operand.hbm [shape: f32[4,32,256], index: 3, kind: output, shape index: {}, may-alias: {0,3}]  }
   0x1   :  { %10 = vsyncpa [#allocation3 + $0x1], 0 }
   0x2   :  { %11 = vsyncpa [#allocation4], 0 }
   0x3   :  { %13 = vsyncpa [#allocation4 + $0x1], 0  ;;  %s857_s12 = smov 0   ;;  %s859_s13 = smov 0  }
   0x4   :  { %s861_s14 = smov 0   ;;  %s863_s15 = smov 0  }
   0x5 LB: > { %s878_s16 = sadd.s32 4294967295, %s827_s15   ;;  %s628_s17 = sadd.s32 4294967294, %s827_s15   ;;  %s827_s15 = sphi %s863_s15, %s1138_s15   ;;  %s823_s14 = sphi %s861_s14, %s1137_s14   ;;  %s819_s13 = sphi %s859_s13, %s1136_s13   ;;  %s815_s12 = sphi %s857_s12, %s1135_s12  }
   0x6   : > { %s882_s18 = sadd.s32 1, %s827_s15   ;;  %s26_s19 = sadd.s32 1, %s823_s14 }
   0x7   : > { %s23_s20 = ssub.s32 %s827_s15, %s882_s18  ;;  %p33_p0 = scmp.ne.s32.totalorder %s823_s14, %s819_s13 }
   0x8   : > { %p24_p1 = scmp.eq.s32.totalorder %s23_s20, 0  ;;  %p34_p2 = scmp.eq.s32.totalorder %s827_s15, 0 }
   0x9   : > { %p39_p3 = scmp.ne.s32.totalorder %s819_s13, %s815_s12  ;;  %p40_p4 = scmp.eq.s32.totalorder %s878_s16, 0 }
   0xa   : > { %s894_s21 = scalar_select %p24_p1, %s823_s14, %s26_s19  }
   0xb   : > { %p896_p5 = por %p34_p2, %p33_p0  ;;  %p900_p6 = por %p40_p4, %p39_p3 }
   0xc   : > { %p105_p7 = scmp.eq.s32.totalorder %s878_s16, 1  ;;  %p111_p8 = scmp.eq.s32.totalorder %s628_s17, 1 }
   0xd   : > { %s1127_s23 = scalar_select %p900_p6, 1, 0 }
   0xe   : > { %p691_p10 = scmp.lt.s32.totalorder %s827_s15, 2  ;;  %p907_p11 = por %p105_p7, %p33_p0 }
   0xf   : > { %p911_p12 = por %p111_p8, %p39_p3  ;;  %s137_s26 = sand.u32 1, %s823_s14  }
  0x10   : > { %s1128_s24 = scalar_select %p907_p11, 1, 0 }
  0x11   : > { %s1129_s25 = scalar_select %p911_p12, 1, 0 }
  0x12   : > { %s653_s27 = sshll.u32 %s827_s15, 11  ;;  %s631_s28 = sshll.u32 %s137_s26, 7 }
  0x13   : > { %s920_s4 = scalar_lea.hbm %s1120_s0, %s653_s27  ;;  %s141_s5 = scalar_lea.vmem [#allocation2], %s631_s28 }
  0x14   : > { %s149_s6 = sshll.u32 %s141_s5, 4  ;;  %p924_p13 = pnand %p691_p10, %p896_p5  ;;  %s928_s6 = int_to_ptr.vmem [resolvable:$true] %s149_s6 }
  0x15   : > { %s930_s8 = scalar_lea.sflag [#allocation3], %s137_s26  ;;  %s735_s9 = scalar_lea.hbm %s920_s4, 2048 }
  0x16   : > { %p736_p0 = scmp.ne.s32.totalorder %s920_s4, %s735_s9  ;;  %p737_p1 = pneg %p924_p13 }
  0x17   : > { %s740_s17 = scalar_lea.hbm %s1120_s0, 4096  ;;  %p741_p4 = scmp.lt.s32.totalorder %s920_s4, %s1120_s0 }
  0x18   : > { %p738_p2 = pnand %p737_p1, %p736_p0  ;;  %p742_p5 = scmp.lt.s32.totalorder %s740_s17, %s735_s9 }
  0x1a   : > { %p739_p3 = pneg %p738_p2  ;;  %p743_p7 = por %p742_p5, %p741_p4 }
  0x1c   : > { %p744_p8 = pnand %p743_p7, %p739_p3 }
  0x1e   : > { %747 = shalt.err (!%p744_p8)
}
  0x1f   : > { %s748_s22 = scalar_lea.vmem %s928_s6, 2048  ;;  %s829_s26 = smov [#allocation2]  }
  0x20   : > { %p749_p10 = scmp.ne.s32.totalorder %s928_s6, %s748_s22  ;;  %s753_s27 = sshll.u32 %s829_s26, 4  ;;  %s754_s27 = int_to_ptr.vmem [resolvable:$false] %s753_s27 }
  0x21   : > { %s755_s28 = scalar_lea.vmem %s754_s27, 4096  ;;  %p756_p2 = scmp.lt.s32.totalorder %s928_s6, %s754_s27 }
  0x22   : > { %p751_p9 = pnand %p749_p10, %p737_p1  ;;  %p757_p12 = scmp.lt.s32.totalorder %s755_s28, %s748_s22 }
  0x24   : > { %p752_p0 = pneg %p751_p9  ;;  %p758_p11 = por %p757_p12, %p756_p2 }
  0x26   : > { %p759_p6 = pnand %p758_p11, %p752_p0 }
  0x28   : > { %762 = shalt.err (!%p759_p6)
}
  0x29   : > { %s830_s29 = smov 256   ;;  %s831_s30 = smov 16  }
  0x2a   : > { %686 = dma.hbm_to_vmem [thread:$0]  (!%p924_p13), %s920_s4, 2048, %s928_s6, %s930_s8, %s830_s29, %s830_s29, %s831_s30  }
  0x2b   : > { %p635_p9 = scmp.ge.s32.totalorder %s827_s15, 1  ;;  %p157_p1 = scmp.lt.s32.totalorder %s827_s15, 3 }
  0x2d   : > { %p158_p3 = pnand %p635_p9, %p157_p1 }
  0x2e   : > { %s954_s5 = sand.u32 (!%p158_p3), 1, %s819_s13   ;;  %p1131_p6 = scmp.ne.s32.totalorder (!%p158_p3), %s1127_s23, 0 }
  0x2f   : > { %161 = sbr.rel (%p158_p3) target bundleno = 782 (0x30e), region = 32  ;;  %s636_s9 = sshll.u32 (!%p158_p3), %s954_s5, 7 }
  0x30   : > { %s164_s10 = scalar_lea.sflag (!%p158_p3), [#allocation3], %s954_s5  ;;  %s167_s11 = scalar_lea.vmem (!%p158_p3), [#allocation2], %s636_s9 }
  0x34   : > { %806 = dma.done.wait (%p1131_p6), %s164_s10, 2048  }
  0x35   : > { %808 = vsyncadd (%p1131_p6), %s164_s10, 4294965248  ;;  %v964_v0 = vld [vmem:[%s167_s11 + $0x40] sm:$0xff]  ;;  %v966_v1 = vld [vmem:[%s167_s11 + $0x48] sm:$0xff]  ;;  %v832_v24 = vmov 0.0   ;;  %vm297_vm0 = vcmask 261120   ;;  %vm833_vm1 = vmmov 0   ;;  %v249_v29 = vlaneseq }
  0x36   : > { %v968_v2 = vld [vmem:[%s167_s11] sm:$0xff]  ;;  %v220_v3 = vadd.f32 %v966_v1, %v964_v0  ;;  %v972_v4 = vld [vmem:[%s167_s11 + $0x8] sm:$0xff]  ;;  %v974_v5 = vld [vmem:[%s167_s11 + $0x50] sm:$0xff]  ;;  %663 = vmatprep.subr.mxu0 %v832_v24  ;;  %668 = vmatprep.subr.mxu1 %v832_v24  ;;  %vm378_vm2 = vcmask 15360   ;;  %vm260_vm3 = vcmask 130112   ;;  %vm267_vm4 = vcmask 195712  }
  0x37   : > { %v976_v6 = vld [vmem:[%s167_s11 + $0x58] sm:$0xff]  ;;  %v208_v7 = vadd.f32 %v972_v4, %v968_v2  ;;  %v980_v8 = vld [vmem:[%s167_s11 + $0x10] sm:$0xff]  ;;  %v988_v12 = vld [vmem:[%s167_s11 + $0x60] sm:$0xff]  ;;  %665 = vmatprep.mubr.msk.f32.mxu0 %vm833_vm1, %v832_v24  ;;  %676 = vmatprep.mubr.msk.f32.mxu1 %vm833_vm1, %v832_v24  ;;  %v250_v31 = vand.u32 127, %v249_v29  ;;  %v252_v36 = vshrl.u32 %v249_v29, 7  ;;  %vm274_vm5 = vcmask 261312  }
  0x38   : > { %v982_v9 = vld [vmem:[%s167_s11 + $0x18] sm:$0xff]  ;;  %221 = vadd.xlane.f32.xlu1 %v220_v3  ;;  %v223_v10 = vadd.f32 %v976_v6, %v974_v5  ;;  %v990_v13 = vld [vmem:[%s167_s11 + $0x68] sm:$0xff]  ;;  %v992_v14 = vld [vmem:[%s167_s11 + $0x20] sm:$0xff]  ;;  %vm295_vm6 = vcmask 1041409   ;;  %s1040_s27 = scalar_lea.vmem [#allocation5], %s636_s9  ;;  %s655_s28 = sshll.u32 %s878_s16, 11 }
  0x39   : > { %209 = vadd.xlane.f32.xlu0 %v208_v7  ;;  %v211_v11 = vadd.f32 %v982_v9, %v980_v8  ;;  %v994_v15 = vld [vmem:[%s167_s11 + $0x28] sm:$0xff]  ;;  %v226_v16 = vadd.f32 %v990_v13, %v988_v12  ;;  %v1000_v18 = vld [vmem:[%s167_s11 + $0x70] sm:$0xff]  ;;  %v1002_v19 = vld [vmem:[%s167_s11 + $0x78] sm:$0xff]  ;;  %v255_v33 = vadd.s32 4294967288, %v250_v31  ;;  %v262_v35 = vadd.s32 4294967280, %v250_v31  ;;  %s555_s29 = sshll.u32 %s1040_s27, 4  ;;  %s1071_s10 = scalar_lea.hbm %s1123_s3, %s655_s28  ;;  %s1073_s29 = int_to_ptr.vmem [resolvable:$true] %s555_s29 }
  0x3a   : > { %v214_v17 = vadd.f32 %v994_v15, %v992_v14  ;;  %v1004_v20 = vld [vmem:[%s167_s11 + $0x30] sm:$0xff]  ;;  %v1006_v21 = vld [vmem:[%s167_s11 + $0x38] sm:$0xff]  ;;  %v229_v22 = vadd.f32 %v1002_v19, %v1000_v18  ;;  %v240_v25 = vld [vmem:[%s1121_s1] sm:$0x3]  ;;  %v269_v40 = vadd.s32 4294967272, %v250_v31  ;;  %v253_v44 = vsub.s32 %v250_v31, %v252_v36  ;;  %s541_s16 = scalar_lea.sflag [#allocation4], %s954_s5 }
  0x3b   : > { %v217_v23 = vadd.f32 %v1006_v21, %v1004_v20  ;;  %664 = vmatpush3.xpose.msk.msra.mxu0 %vm297_vm0, %v240_v25  ;;  %v377_v26 = vld [vmem:[%s1122_s2 + $0x18] sm:$0xff]  ;;  %v376_v27 = vld [vmem:[%s1122_s2 + $0x10] sm:$0xff]  ;;  %v375_v28 = vld [vmem:[%s1122_s2 + $0x8] sm:$0xff]  ;;  %v258_v38 = vsub.s32 %v255_v33, %v252_v36  ;;  %v265_v42 = vsub.s32 %v262_v35, %v252_v36  ;;  %v472_v31 = vsub.s32 0, %v252_v36  ;;  %s763_s11 = scalar_lea.vmem %s1073_s29, 2048  ;;  %p1132_p12 = scmp.ne.s32.totalorder %s1128_s24, 0 }
  0x3c   : > { %224 = vadd.xlane.f32.xlu1 %v223_v10  ;;  %669 = vmatpush3.xpose.msk.msra.mxu1 %vm378_vm2, %v377_v26  ;;  %v272_v51 = vsub.s32 %v269_v40, %v252_v36  ;;  %p764_p11 = scmp.ne.s32.totalorder %s1073_s29, %s763_s11  ;;  %s834_s23 = smov [#allocation5]  }
  0x3d   : > { %212 = vadd.xlane.f32.xlu0 %v211_v11  ;;  %670 = vmatprep.subr.mxu1 %v832_v24  ;;  %s767_s4 = sshll.u32 %s834_s23, 4  ;;  %s768_s4 = int_to_ptr.vmem [resolvable:$false] %s767_s4 }
  0x3e   : > { %p765_p13 = pnand %p764_p11, %p1132_p12  ;;  %s769_s6 = scalar_lea.vmem %s768_s4, 4096 }
  0x3f   : > { %p770_p5 = scmp.lt.s32.totalorder %s1073_s29, %s768_s4  ;;  %p771_p7 = scmp.lt.s32.totalorder %s769_s6, %s763_s11 }
  0x40   : > { %227 = vadd.xlane.f32.xlu1 %v226_v16  ;;  %671 = vmatpush3.xpose.msk.msra.mxu1 %vm378_vm2, %v376_v27  ;;  %p766_p4 = pneg %p765_p13 }
  0x41   : > { %215 = vadd.xlane.f32.xlu0 %v214_v17  ;;  %672 = vmatprep.subr.mxu1 %v832_v24  ;;  %p772_p8 = por %p771_p7, %p770_p5 }
  0x43   : > { %p773_p10 = pnand %p772_p8, %p766_p4 }
  0x44   : > { %230 = vadd.xlane.f32.xlu1 %v229_v22  ;;  %673 = vmatpush3.xpose.msk.msra.mxu1 %vm378_vm2, %v375_v28  ;;  %v374_v22 = vld [vmem:[%s1122_s2] sm:$0xff] }
  0x45   : > { %218 = vadd.xlane.f32.xlu0 %v217_v23  ;;  %674 = vmatprep.subr.mxu1 %v832_v24 }
  0x48   : > { %675 = vmatpush3.xpose.msk.msra.mxu1 %vm378_vm2, %v374_v22 }
  0xc1   : > { %v222_v30 = vpop.xlane.xlu1 %221 }
  0xc2   : > { %v210_v32 = vpop.xlane.xlu0 %209  ;;  %v236_v45 = vmul.f32 0.00390625, %v222_v30 }
  0xc3   : > { %v232_v48 = vmul.f32 0.00390625, %v210_v32 }
  0xc4   : > { %v279_v55 = vrot.slane %v236_v45, %v253_v44 }
  0xc5   : > { %v225_v34 = vpop.xlane.xlu1 %224  ;;  %v254_v59 = vrot.slane %v232_v48, %v253_v44 }
  0xc6   : > { %v213_v37 = vpop.xlane.xlu0 %212  ;;  %v237_v39 = vmul.f32 0.00390625, %v225_v34  ;;  %v491_v34 = vsub.s32 1, %v252_v36 }
  0xc7   : > { %v233_v41 = vmul.f32 0.00390625, %v213_v37 }
  0xc8   : > { %v283_v50 = vrot.slane %v237_v39, %v258_v38 }
  0xc9   : > { %v228_v43 = vpop.xlane.xlu1 %227  ;;  %v259_v52 = vrot.slane %v233_v41, %v258_v38 }
  0xca   : > { %v238_v46 = vmul.f32 0.00390625, %v228_v43  ;;  %v216_v47 = vpop.xlane.xlu0 %215  ;;  %v284_v61 = vsel %vm260_vm3, %v283_v50, %v279_v55 }
  0xcb   : > { %v234_v49 = vmul.f32 0.00390625, %v216_v47  ;;  %v261_v63 = vsel %vm260_vm3, %v259_v52, %v254_v59 }
  0xcc   : > { %v288_v53 = vrot.slane %v238_v46, %v265_v42 }
  0xcd   : > { %v231_v54 = vpop.xlane.xlu1 %230  ;;  %v266_v56 = vrot.slane %v234_v49, %v265_v42 }
  0xce   : > { %v239_v57 = vmul.f32 0.00390625, %v231_v54  ;;  %v219_v58 = vpop.xlane.xlu0 %218  ;;  %v289_v3 = vsel %vm267_vm4, %v288_v53, %v284_v61 }
  0xcf   : > { %v235_v60 = vmul.f32 0.00390625, %v219_v58  ;;  %v268_v10 = vsel %vm267_vm4, %v266_v56, %v261_v63 }
  0xd0   : > { %v293_v62 = vrot.slane %v239_v57, %v272_v51 }
  0xd1   : > { %v273_v7 = vrot.slane %v235_v60, %v272_v51 }
  0xd2   : > { %v294_v11 = vsel %vm274_vm5, %v293_v62, %v289_v3 }
  0xd3   : > { %v275_v16 = vsel %vm274_vm5, %v273_v7, %v268_v10 }
  0xd4   : > { %v296_v17 = vsel %vm295_vm6, %v294_v11, %v275_v16 }
  0xd5   : > { %666 = vmatmul.mubr.msk.f32.vlgmr.msra.gmra.mxu0 %vm297_vm0, %v296_v17 }
 0x195   : > { %v369_v23 = vpop.f32.mrf.mxu0 }
 0x196   : > { %v373_v24 = vmax.f32 %v369_v23, 0.0 }
 0x197   : > { %v667_v25 = vpop.f32.mrf.mxu0 }
 0x198   : > { %677 = vmatmul.mubr.msk.f32.vlgmr.msra.gmra.mxu1 %vm378_vm2, %v373_v24 }
 0x258   : > { %v460_v26 = vpop.f32.mrf.mxu1 }
 0x259   : > { %v645_v27 = vmul.f32 -1.442695, %v460_v26 }
 0x25a   : > { %v678_v28 = vpop.f32.mrf.mxu1 }
 0x25b   : > { %731 = vpow2.f32 %v645_v27 }
 0x268   : > { %v732_v29 = vpop.eup %731 }
 0x269   : > { %v467_v30 = vadd.f32 1.0, %v732_v29 }
 0x26b   : > { %733 = vrcp.f32 %v467_v30 }
 0x278   : > { %v734_v32 = vpop.eup %733 }
 0x279   : > { %v473_v33 = vrot.slane %v734_v32, %v472_v31  ;;  %v492_v35 = vrot.slane %v734_v32, %v491_v34 }
 0x27b   : > { %479 = vbcast.lane.b32.xlu1 %v473_v33, 264  ;;  %475 = vbcast.lane.b32.xlu0 %v473_v33, 256 }
 0x27f   : > { %483 = vbcast.lane.b32.xlu1 %v473_v33, 272  ;;  %494 = vbcast.lane.b32.xlu0 %v492_v35, 256 }
 0x283   : > { %487 = vbcast.lane.b32.xlu1 %v473_v33, 280  ;;  %502 = vbcast.lane.b32.xlu0 %v492_v35, 272 }
 0x287   : > { %498 = vbcast.lane.b32.xlu1 %v492_v35, 264 }
 0x28b   : > { %506 = vbcast.lane.b32.xlu1 %v492_v35, 280 }
 0x2ed   : > { %v480_v37 = vpop.permute.xlu1 %479  ;;  %v476_v38 = vpop.permute.xlu0 %475 }
 0x2ee   : > { %v510_v39 = vmul.f32 %v480_v37, %v980_v8  ;;  %v511_v40 = vmul.f32 %v480_v37, %v982_v9  ;;  %v508_v41 = vmul.f32 %v476_v38, %v968_v2  ;;  %v509_v36 = vmul.f32 %v476_v38, %v972_v4 }
 0x2f0   : > { %526 = vst [vmem:[%s1040_s27 + $0x10] sm:$0xff] %v510_v39  ;;  %527 = vst [vmem:[%s1040_s27 + $0x18] sm:$0xff] %v511_v40 }
 0x2f1   : > { %524 = vst [vmem:[%s1040_s27] sm:$0xff] %v508_v41  ;;  %525 = vst [vmem:[%s1040_s27 + $0x8] sm:$0xff] %v509_v36  ;;  %v484_v8 = vpop.permute.xlu1 %483  ;;  %v495_v2 = vpop.permute.xlu0 %494 }
 0x2f2   : > { %v512_v4 = vmul.f32 %v484_v8, %v992_v14  ;;  %v513_v9 = vmul.f32 %v484_v8, %v994_v15  ;;  %v516_v42 = vmul.f32 %v495_v2, %v964_v0  ;;  %v517_v43 = vmul.f32 %v495_v2, %v966_v1 }
 0x2f4   : > { %528 = vst [vmem:[%s1040_s27 + $0x20] sm:$0xff] %v512_v4  ;;  %529 = vst [vmem:[%s1040_s27 + $0x28] sm:$0xff] %v513_v9 }
 0x2f5   : > { %532 = vst [vmem:[%s1040_s27 + $0x40] sm:$0xff] %v516_v42  ;;  %533 = vst [vmem:[%s1040_s27 + $0x48] sm:$0xff] %v517_v43  ;;  %v488_v44 = vpop.permute.xlu1 %487  ;;  %v503_v45 = vpop.permute.xlu0 %502 }
 0x2f6   : > { %v514_v14 = vmul.f32 %v488_v44, %v1004_v20  ;;  %v515_v46 = vmul.f32 %v488_v44, %v1006_v21  ;;  %v520_v15 = vmul.f32 %v503_v45, %v988_v12  ;;  %v521_v0 = vmul.f32 %v503_v45, %v990_v13 }
 0x2f8   : > { %530 = vst [vmem:[%s1040_s27 + $0x30] sm:$0xff] %v514_v14  ;;  %531 = vst [vmem:[%s1040_s27 + $0x38] sm:$0xff] %v515_v46 }
 0x2f9   : > { %536 = vst [vmem:[%s1040_s27 + $0x60] sm:$0xff] %v520_v15  ;;  %537 = vst [vmem:[%s1040_s27 + $0x68] sm:$0xff] %v521_v0  ;;  %v499_v1 = vpop.permute.xlu1 %498 }
 0x2fa   : > { %v518_v47 = vmul.f32 %v499_v1, %v974_v5  ;;  %v519_v48 = vmul.f32 %v499_v1, %v976_v6 }
 0x2fc   : > { %534 = vst [vmem:[%s1040_s27 + $0x50] sm:$0xff] %v518_v47  ;;  %535 = vst [vmem:[%s1040_s27 + $0x58] sm:$0xff] %v519_v48 }
 0x2fd   : > { %v507_v12 = vpop.permute.xlu1 %506 }
 0x2fe   : > { %v522_v5 = vmul.f32 %v507_v12, %v1000_v18  ;;  %v523_v13 = vmul.f32 %v507_v12, %v1002_v19 }
 0x300   : > { %538 = vst [vmem:[%s1040_s27 + $0x70] sm:$0xff] %v522_v5  ;;  %539 = vst [vmem:[%s1040_s27 + $0x78] sm:$0xff] %v523_v13 }
 0x301   : > { %776 = shalt.err (!%p773_p10)
}
 0x302   : > { %s777_s7 = scalar_lea.hbm %s1071_s10, 2048  ;;  %s781_s19 = scalar_lea.hbm %s1123_s3, 4096 }
 0x303   : > { %p778_p0 = scmp.ne.s32.totalorder %s1071_s10, %s777_s7  ;;  %p782_p1 = scmp.lt.s32.totalorder %s1071_s10, %s1123_s3 }
 0x304   : > { %p783_p3 = scmp.lt.s32.totalorder %s781_s19, %s777_s7 }
 0x305   : > { %p779_p2 = pnand %p778_p0, %p1132_p12 }
 0x306   : > { %p784_p6 = por %p783_p3, %p782_p1 }
 0x307   : > { %p780_p9 = pneg %p779_p2 }
 0x309   : > { %p785_p11 = pnand %p784_p6, %p780_p9 }
 0x30b   : > { %788 = shalt.err (!%p785_p11)
}
 0x30c   : > { %s835_s26 = smov 256   ;;  %s836_s27 = smov 16  }
 0x30d   : > { %681 = dma.vmem_to_hbm [thread:$0]  (%p1132_p12), %s1073_s29, 2048, %s1071_s10, %s541_s16, %s835_s26, %s835_s26, %s836_s27  }
 0x30e PF: > { %s570_s28 = sand.u32 1, %s815_s12   ;;  %p1133_p13 = scmp.ne.s32.totalorder %s1129_s25, 0 }
 0x30f   : > { %p1134_p4 = scmp.ge.s32.totalorder %s827_s15, 2  ;;  %s571_s30 = scalar_lea.sflag [#allocation4], %s570_s28 }
 0x311   : > { %p688_p5 = pnand %p1134_p4, %p1133_p13 }
 0x313   : > { %p689_p7 = pneg %p688_p5 }
 0x315   : > { %810 = dma.done.wait (%p689_p7), %s571_s30, 2048  }
 0x316   : > { %812 = vsyncadd (%p689_p7), %s571_s30, 4294965248  ;;  %p16_p8 = scmp.ge.s32.totalorder %s882_s18, 4   ;;  %s1135_s12 = smov %s819_s13 }
 0x317   : > { %s1136_s13 = smov %s823_s14  ;;  %s1137_s14 = smov %s894_s21 }
 0x318   : > { %s1138_s15 = smov %s882_s18  ;;  %18 = sbr.rel (!%p16_p8) target bundleno = 5 (0x5), region = 77 }
 0x31d   :  { %576 = vsyncpa [#allocation3], 1 }
 0x31e   :  { %578 = vsyncpa [#allocation3 + $0x1], 1 }
 0x31f   :  { %579 = vsyncpa [#allocation4], 1 }
 0x320   :  { %581 = vsyncpa [#allocation4 + $0x1], 1 }

</bundles_post_ra>
